<compile_context>
chip_gen: v7x
topology: tpu7x:2x2x1
jax: 0.10.0
libtpu: 0.0.40
codegen_flags: <defaults>
</compile_context>

<pallas_src>
import functools

import jax
import jax.numpy as jnp
from jax.experimental import pallas as pl
from jax.experimental.pallas import tpu as pltpu

A_PAD = 128  # lane-dense action axis inside the kernel


def policy_net_kernel(x_ref, w1_ref, b1_ref, w2_ref, b2_ref, o_ref):
    # fc1 + ReLU (bf16 MXU inputs, f32 accumulation / elementwise)
    x = x_ref[...].astype(jnp.bfloat16)
    h = jnp.dot(x, w1_ref[...], preferred_element_type=jnp.float32) + b1_ref[...]
    h = jnp.maximum(h, 0.0)
    # fc2 (padded to 128 output lanes; padded columns carry a -1e30 bias)
    logits = (jnp.dot(h.astype(jnp.bfloat16), w2_ref[...],
                      preferred_element_type=jnp.float32) + b2_ref[...])
    # softmax over the action axis (padded columns underflow to exactly 0).
    m = jnp.max(logits, axis=-1, keepdims=True)
    e = jnp.exp(logits - m)
    denom = jnp.sum(e, axis=-1, keepdims=True)
    # Exact divide (not approx reciprocal): rows must sum to 1 to f32 precision
    # for the policy-gradient sampling / log-prob consumers.
    o_ref[...] = e / denom


def prepare_fc2(w2, b2):
    """One-time padding of fc2 params to a lane-dense (H, 128) layout.

    Padded columns get zero weights and a -1e30 bias so their softmax
    probability is exactly 0 (valid as long as logits stay f32).
    """
    H, A = w2.shape
    w2p = jnp.zeros((H, A_PAD), w2.dtype).at[:, :A].set(w2)
    b2p = jnp.full((1, A_PAD), -1e30, jnp.float32).at[:, :A].set(b2)
    return w2p, b2p


@functools.partial(jax.jit, static_argnames=("action_num",))
def policy_net_forward(x, w1, b1, w2p, b2p, *, action_num):
    """x: (B, S) f32; w1: (S, H) bf16; b1: (1, H) f32; w2p/b2p pre-padded via prepare_fc2."""
    B, S = x.shape
    H = w1.shape[1]

    # Pad the batch. Single fat tile up to 1024 rows (per-step overhead dominates
    # at these model widths); 1024-row tiles beyond that so large rollout batches
    # keep >=2 parallel grid steps (second TensorCore on v7x).
    if B <= 1024:
        b_pad = max(8, ((B + 7) // 8) * 8)
        tb = b_pad
    else:
        b_pad = ((B + 1023) // 1024) * 1024
        tb = 1024
    if b_pad != B:
        x = jnp.pad(x, ((0, b_pad - B), (0, 0)))
    n_tiles = b_pad // tb

    out = pl.pallas_call(
        policy_net_kernel,
        out_shape=jax.ShapeDtypeStruct((b_pad, A_PAD), jnp.float32),
        grid=(n_tiles,),
        in_specs=[
            pl.BlockSpec((tb, S), lambda i: (i, 0)),      # x: batch-tiled, pipelined
            pl.BlockSpec((S, H), lambda i: (0, 0)),       # w1: VMEM-resident
            pl.BlockSpec((1, H), lambda i: (0, 0)),       # b1: VMEM-resident
            pl.BlockSpec((H, A_PAD), lambda i: (0, 0)),   # w2 (padded): VMEM-resident
            pl.BlockSpec((1, A_PAD), lambda i: (0, 0)),   # b2 (padded): VMEM-resident
        ],
        out_specs=pl.BlockSpec((tb, A_PAD), lambda i: (i, 0)),
        compiler_params=pltpu.CompilerParams(
            dimension_semantics=("parallel",),  # shard batch tiles across TCs on v7x
        ),
    )(x, w1, b1, w2p, b2p)

    return out[:B, :action_num]


def init_params(key, state_dim, action_num, hidden_dim):
    # Deterministic init mimicking nn.Linear's default U(-1/sqrt(fan_in), 1/sqrt(fan_in)).
    # Weights are stored transposed vs. PyTorch (in_dim, out_dim) and cast to bf16
    # (MXU-native); biases stay f32.
    k1, k2, k3, k4 = jax.random.split(key, 4)
    bound1 = 1.0 / jnp.sqrt(state_dim)
    bound2 = 1.0 / jnp.sqrt(hidden_dim)
    w1 = jax.random.uniform(k1, (state_dim, hidden_dim), jnp.float32,
                            -bound1, bound1).astype(jnp.bfloat16)
    b1 = jax.random.uniform(k2, (1, hidden_dim), jnp.float32, -bound1, bound1)
    w2 = jax.random.uniform(k3, (hidden_dim, action_num), jnp.float32,
                            -bound2, bound2).astype(jnp.bfloat16)
    b2 = jax.random.uniform(k4, (1, action_num), jnp.float32, -bound2, bound2)
    return w1, b1, w2, b2


def reference_forward(x, w1, b1, w2, b2):
    # Same quantization as the kernel: bf16 matmul inputs, f32 accumulation & elementwise.
    h = jnp.dot(x.astype(jnp.bfloat16), w1, preferred_element_type=jnp.float32) + b1
    h = jnp.maximum(h, 0.0)
    logits = jnp.dot(h.astype(jnp.bfloat16), w2, preferred_element_type=jnp.float32) + b2
    return jax.nn.softmax(logits, axis=1)


if __name__ == "__main__":
    # Policy-gradient-agent shapes (LunarLander-like): state_dim=8, action_num=4,
    # hidden_dim=32. Batch of 256 rollout states -> a single 256-row tile.
    B, state_dim, action_num, hidden_dim = 256, 8, 4, 32

    key = jax.random.PRNGKey(0)
    kx, kp = jax.random.split(key)
    x = jax.random.normal(kx, (B, state_dim), jnp.float32)
    w1, b1, w2, b2 = init_params(kp, state_dim, action_num, hidden_dim)
    w2p, b2p = prepare_fc2(w2, b2)  # one-time, outside the hot path

    out = policy_net_forward(x, w1, b1, w2p, b2p, action_num=action_num)
    out = jax.block_until_ready(out)

    ref = reference_forward(x, w1, b1, w2, b2)
    assert out.shape == (B, action_num)
    assert bool(jnp.all(jnp.isfinite(out)))
    # bf16 matmul inputs -> loosened tolerance vs. a pure-f32 path.
    assert jnp.allclose(out, ref, atol=2e-3, rtol=0)
    # Exact softmax divide -> rows sum to 1 to f32 precision.
    assert jnp.allclose(jnp.sum(out, axis=1), jnp.ones((B,)), atol=1e-5)

    print("KERNEL_OK")
</pallas_src>

<mosaic_0001>
module attributes {stable_mosaic.version = 11 : i64} {
  func.func @policy_net_kernel(%arg0: i32, %arg1: memref<256x8xf32, #tpu.memory_space<vmem>>, %arg2: memref<8x32xbf16, #tpu.memory_space<vmem>>, %arg3: memref<1x32xf32, #tpu.memory_space<vmem>>, %arg4: memref<32x128xbf16, #tpu.memory_space<vmem>>, %arg5: memref<1x128xf32, #tpu.memory_space<vmem>>, %arg6: memref<256x128xf32, #tpu.memory_space<vmem>>) attributes {dimension_semantics = [#tpu.dimension_semantics<parallel>], iteration_bounds = array<i64: 1>, scalar_prefetch = 0 : i64, scratch_operands = 0 : i64, tpu.core_type = #tpu.core_type<tc>, window_params = [{transform_indices = @transform_0, window_bounds = array<i64: 256, 8>}, {pipeline_mode = #tpu.pipeline_mode<synchronous>, transform_indices = @transform_1, window_bounds = array<i64: 8, 32>}, {pipeline_mode = #tpu.pipeline_mode<synchronous>, transform_indices = @transform_2, window_bounds = array<i64: 1, 32>}, {pipeline_mode = #tpu.pipeline_mode<synchronous>, transform_indices = @transform_3, window_bounds = array<i64: 32, 128>}, {pipeline_mode = #tpu.pipeline_mode<synchronous>, transform_indices = @transform_4, window_bounds = array<i64: 1, 128>}, {transform_indices = @transform_5, window_bounds = array<i64: 256, 128>}]} {
    %c0 = arith.constant 0 : index
    %c0_0 = arith.constant 0 : index
    %0 = vector.load %arg1[%c0, %c0_0] : memref<256x8xf32, #tpu.memory_space<vmem>>, vector<256x8xf32>
    %1 = arith.truncf %0 : vector<256x8xf32> to vector<256x8xbf16>
    %c0_1 = arith.constant 0 : index
    %c0_2 = arith.constant 0 : index
    %2 = vector.load %arg2[%c0_1, %c0_2] : memref<8x32xbf16, #tpu.memory_space<vmem>>, vector<8x32xbf16>
    %cst = arith.constant dense<0.000000e+00> : vector<256x32xf32>
    %3 = tpu.matmul %1, %2, %cst {dimension_numbers = #tpu.dot_dimension_numbers<[1], [0], [0], [1], [0, 0, 1, 1], [], []>} : vector<256x8xbf16>, vector<8x32xbf16>, vector<256x32xf32> -> vector<256x32xf32>
    %c0_3 = arith.constant 0 : index
    %c0_4 = arith.constant 0 : index
    %4 = vector.load %arg3[%c0_3, %c0_4] : memref<1x32xf32, #tpu.memory_space<vmem>>, vector<1x32xf32>
    %5 = vector.broadcast %4 : vector<1x32xf32> to vector<256x32xf32>
    %6 = arith.addf %3, %5 : vector<256x32xf32>
    %cst_5 = arith.constant 0.000000e+00 : f32
    %7 = vector.broadcast %cst_5 : f32 to vector<256x32xf32>
    %8 = arith.maximumf %6, %7 : vector<256x32xf32>
    %9 = arith.truncf %8 : vector<256x32xf32> to vector<256x32xbf16>
    %c0_6 = arith.constant 0 : index
    %c0_7 = arith.constant 0 : index
    %10 = vector.load %arg4[%c0_6, %c0_7] : memref<32x128xbf16, #tpu.memory_space<vmem>>, vector<32x128xbf16>
    %cst_8 = arith.constant dense<0.000000e+00> : vector<256x128xf32>
    %11 = tpu.matmul %9, %10, %cst_8 {dimension_numbers = #tpu.dot_dimension_numbers<[1], [0], [0], [1], [0, 0, 1, 1], [], []>} : vector<256x32xbf16>, vector<32x128xbf16>, vector<256x128xf32> -> vector<256x128xf32>
    %c0_9 = arith.constant 0 : index
    %c0_10 = arith.constant 0 : index
    %12 = vector.load %arg5[%c0_9, %c0_10] : memref<1x128xf32, #tpu.memory_space<vmem>>, vector<1x128xf32>
    %13 = vector.broadcast %12 : vector<1x128xf32> to vector<256x128xf32>
    %14 = arith.addf %11, %13 : vector<256x128xf32>
    %cst_11 = arith.constant dense<0xFF800000> : vector<256xf32>
    %15 = vector.multi_reduction <maximumf>, %14, %cst_11 [1] : vector<256x128xf32> to vector<256xf32>
    %16 = vector.shape_cast %15 : vector<256xf32> to vector<256x1xf32>
    %17 = vector.broadcast %16 : vector<256x1xf32> to vector<256x128xf32>
    %18 = arith.subf %14, %17 : vector<256x128xf32>
    %19 = math.exp %18 : vector<256x128xf32>
    %cst_12 = arith.constant dense<0.000000e+00> : vector<256xf32>
    %20 = vector.multi_reduction <add>, %19, %cst_12 [1] : vector<256x128xf32> to vector<256xf32>
    %21 = vector.shape_cast %20 : vector<256xf32> to vector<256x1xf32>
    %22 = vector.broadcast %21 : vector<256x1xf32> to vector<256x128xf32>
    %23 = arith.divf %19, %22 : vector<256x128xf32>
    %c0_13 = arith.constant 0 : index
    %c0_14 = arith.constant 0 : index
    %24 = vector.load %arg6[%c0_13, %c0_14] : memref<256x128xf32, #tpu.memory_space<vmem>>, vector<256x128xf32>
    tpu.vector_store %arg6[%c0_13, %c0_14], %23 {strides = array<i32>} : memref<256x128xf32, #tpu.memory_space<vmem>>, vector<256x128xf32>,
    return
  }
  func.func @transform_0(%arg0: i32) -> (i32, i32) {
    %c0_i32 = arith.constant 0 : i32
    %c0_i32_0 = arith.constant 0 : i32
    return %arg0, %c0_i32 : i32, i32
  }
  func.func @transform_1(%arg0: i32) -> (i32, i32) {
    %c0_i32 = arith.constant 0 : i32
    %c0_i32_0 = arith.constant 0 : i32
    %c0_i32_1 = arith.constant 0 : i32
    return %c0_i32, %c0_i32_0 : i32, i32
  }
  func.func @transform_2(%arg0: i32) -> (i32, i32) {
    %c0_i32 = arith.constant 0 : i32
    %c0_i32_0 = arith.constant 0 : i32
    %c0_i32_1 = arith.constant 0 : i32
    return %c0_i32, %c0_i32_0 : i32, i32
  }
  func.func @transform_3(%arg0: i32) -> (i32, i32) {
    %c0_i32 = arith.constant 0 : i32
    %c0_i32_0 = arith.constant 0 : i32
    %c0_i32_1 = arith.constant 0 : i32
    return %c0_i32, %c0_i32_0 : i32, i32
  }
  func.func @transform_4(%arg0: i32) -> (i32, i32) {
    %c0_i32 = arith.constant 0 : i32
    %c0_i32_0 = arith.constant 0 : i32
    %c0_i32_1 = arith.constant 0 : i32
    return %c0_i32, %c0_i32_0 : i32, i32
  }
  func.func @transform_5(%arg0: i32) -> (i32, i32) {
    %c0_i32 = arith.constant 0 : i32
    %c0_i32_0 = arith.constant 0 : i32
    return %arg0, %c0_i32 : i32, i32
  }
}

</mosaic_0001>

<bundles_post_ra>
// kernel: policy_net_forward.1
= control target key start
LH: loop header
LB: loop body
LE: loop exit
PB: predicated region body
PF: predicated region fallthrough
CT: control target
= control target key end

     0   :  { %vm126_vm0 = vcmask 1043456   ;;  %vm77_vm1 = vcmask 64512   ;;  %vm362_vm2 = vcmask 261120   ;;  %s1761_s1 = inlined_call_operand.vmem [shape: bf16[8,32], index: 1, kind: input, shape index: {}]   ;;  %s1762_s0 = inlined_call_operand.vmem [shape: f32[256,8], index: 0, kind: input, shape index: {}]   ;;  %s1763_s3 = inlined_call_operand.vmem [shape: bf16[32,128], index: 3, kind: input, shape index: {}]   ;;  %s1764_s2 = inlined_call_operand.vmem [shape: f32[1,32], index: 2, kind: input, shape index: {}]   ;;  %s1765_s4 = inlined_call_operand.vmem [shape: f32[1,128], index: 4, kind: input, shape index: {}]   ;;  %s1766_s5 = inlined_call_operand.vmem [shape: f32[256,128], index: 5, kind: output, shape index: {}]  }
   0x1   :  { %v69_v0 = vld [vmem:[%s1761_s1] sm:$0xf]  ;;  %v22_v2 = vld [vmem:[%s1762_s0 + $0x8] sm:$0xff]  ;;  %v23_v5 = vld [vmem:[%s1762_s0 + $0x10] sm:$0xff] }
   0x2   :  { %v21_v1 = vld [vmem:[%s1762_s0] sm:$0xff]  ;;  %1037 = vmatprep.subr.msk.bf16.mxu0 %vm126_vm0, %v69_v0  ;;  %v128_v3 = vsel %vm126_vm0, %v69_v0, 0  ;;  %v24_v6 = vld [vmem:[%s1762_s0 + $0x18] sm:$0xff]  ;;  %v26_v9 = vld [vmem:[%s1762_s0 + $0x28] sm:$0xff] }
   0x3   :  { %v53_v4 = vpack.c.bf16 %v22_v2, %v21_v1  ;;  %v25_v7 = vld [vmem:[%s1762_s0 + $0x20] sm:$0xff]  ;;  %968 = vmatpush3.bf16.msra.mxu0 %v128_v3  ;;  %v54_v8 = vpack.c.bf16 %v24_v6, %v23_v5  ;;  %v27_v11 = vld [vmem:[%s1762_s0 + $0x30] sm:$0xff]  ;;  %v28_v12 = vld [vmem:[%s1762_s0 + $0x38] sm:$0xff] }
   0x4   :  { %v55_v10 = vpack.c.bf16 %v26_v9, %v25_v7  ;;  %v29_v13 = vld [vmem:[%s1762_s0 + $0x40] sm:$0xff]  ;;  %v30_v14 = vld [vmem:[%s1762_s0 + $0x48] sm:$0xff]  ;;  %v56_v15 = vpack.c.bf16 %v28_v12, %v27_v11  ;;  %v31_v17 = vld [vmem:[%s1762_s0 + $0x50] sm:$0xff] }
   0x5   :  { %969 = vmatprep.mubr.msk.bf16.mxu0 %vm77_vm1, %v53_v4  ;;  %v57_v16 = vpack.c.bf16 %v30_v14, %v29_v13  ;;  %v32_v18 = vld [vmem:[%s1762_s0 + $0x58] sm:$0xff]  ;;  %v33_v19 = vld [vmem:[%s1762_s0 + $0x60] sm:$0xff]  ;;  %v34_v20 = vld [vmem:[%s1762_s0 + $0x68] sm:$0xff] }
   0x6   :  { %970 = vmatmul.mubr.msk.bf16.vlgmr.msra.gmra.mrb[0].mxu0 %vm77_vm1, %v54_v8  ;;  %v58_v21 = vpack.c.bf16 %v32_v18, %v31_v17  ;;  %v59_v22 = vpack.c.bf16 %v34_v20, %v33_v19  ;;  %v35_v23 = vld [vmem:[%s1762_s0 + $0x70] sm:$0xff]  ;;  %v36_v24 = vld [vmem:[%s1762_s0 + $0x78] sm:$0xff]  ;;  %v37_v25 = vld [vmem:[%s1762_s0 + $0x80] sm:$0xff] }
   0x7   :  { %973 = vmatprep.mubr.msk.bf16.mxu0 %vm77_vm1, %v55_v10  ;;  %v38_v26 = vld [vmem:[%s1762_s0 + $0x88] sm:$0xff]  ;;  %v60_v27 = vpack.c.bf16 %v36_v24, %v35_v23  ;;  %v39_v29 = vld [vmem:[%s1762_s0 + $0x90] sm:$0xff]  ;;  %v40_v30 = vld [vmem:[%s1762_s0 + $0x98] sm:$0xff] }
   0x8   :  { %v61_v28 = vpack.c.bf16 %v38_v26, %v37_v25  ;;  %v41_v31 = vld [vmem:[%s1762_s0 + $0xa0] sm:$0xff]  ;;  %v42_v32 = vld [vmem:[%s1762_s0 + $0xa8] sm:$0xff]  ;;  %v62_v33 = vpack.c.bf16 %v40_v30, %v39_v29  ;;  %v43_v35 = vld [vmem:[%s1762_s0 + $0xb0] sm:$0xff] }
   0x9   :  { %v63_v34 = vpack.c.bf16 %v42_v32, %v41_v31  ;;  %v44_v36 = vld [vmem:[%s1762_s0 + $0xb8] sm:$0xff]  ;;  %v45_v37 = vld [vmem:[%s1762_s0 + $0xc0] sm:$0xff]  ;;  %v46_v38 = vld [vmem:[%s1762_s0 + $0xc8] sm:$0xff] }
   0xa   :  { %v64_v39 = vpack.c.bf16 %v44_v36, %v43_v35  ;;  %v65_v40 = vpack.c.bf16 %v46_v38, %v45_v37  ;;  %v47_v41 = vld [vmem:[%s1762_s0 + $0xd0] sm:$0xff]  ;;  %v48_v42 = vld [vmem:[%s1762_s0 + $0xd8] sm:$0xff]  ;;  %v49_v43 = vld [vmem:[%s1762_s0 + $0xe0] sm:$0xff] }
   0xb   :  { %v50_v44 = vld [vmem:[%s1762_s0 + $0xe8] sm:$0xff]  ;;  %v66_v45 = vpack.c.bf16 %v48_v42, %v47_v41  ;;  %v51_v47 = vld [vmem:[%s1762_s0 + $0xf0] sm:$0xff]  ;;  %v52_v48 = vld [vmem:[%s1762_s0 + $0xf8] sm:$0xff] }
   0xc   :  { %v67_v46 = vpack.c.bf16 %v50_v44, %v49_v43  ;;  %v68_v49 = vpack.c.bf16 %v52_v48, %v51_v47  ;;  %v1038_v50 = vld [vmem:[%s1763_s3] sm:$0xff]   ;;  %v1039_v51 = vld [vmem:[%s1763_s3 + $0x8] sm:$0xff]  }
   0xd   :  { %1001 = vmatprep.subr.bf16.mxu1 %v1038_v50  ;;  %v1322_v52 = vld [vmem:[%s1764_s2] ss:$0 sm:$0xff] }
   0xe   :  { %974 = vmatmul.mubr.msk.bf16.gmra.mrb[4].mxu0 %vm77_vm1, %v56_v15  ;;  %1002 = vmatpush3.bf16.msra.mxu1 %v1038_v50 }
   0xf   :  { %977 = vmatprep.mubr.msk.bf16.mxu0 %vm77_vm1, %v57_v16  ;;  %1003 = vmatprep.subr.bf16.mxu1 %v1039_v51 }
  0x12   :  { %1004 = vmatpush3.bf16.msra.mxu1 %v1039_v51 }
  0x16   :  { %978 = vmatmul.mubr.msk.bf16.gmra.mrb[8].mxu0 %vm77_vm1, %v58_v21 }
  0x17   :  { %981 = vmatprep.mubr.msk.bf16.mxu0 %vm77_vm1, %v59_v22 }
  0x1e   :  { %982 = vmatmul.mubr.msk.bf16.gmra.mrb[12].mxu0 %vm77_vm1, %v60_v27 }
  0x1f   :  { %985 = vmatprep.mubr.msk.bf16.mxu0 %vm77_vm1, %v61_v28 }
  0x26   :  { %986 = vmatmul.mubr.msk.bf16.gmra.mrb[16].mxu0 %vm77_vm1, %v62_v33 }
  0x27   :  { %989 = vmatprep.mubr.msk.bf16.mxu0 %vm77_vm1, %v63_v34 }
  0x2e   :  { %990 = vmatmul.mubr.msk.bf16.gmra.mrb[20].mxu0 %vm77_vm1, %v64_v39 }
  0x2f   :  { %993 = vmatprep.mubr.msk.bf16.mxu0 %vm77_vm1, %v65_v40 }
  0x36   :  { %994 = vmatmul.mubr.msk.bf16.gmra.mrb[24].mxu0 %vm77_vm1, %v66_v45 }
  0x37   :  { %997 = vmatprep.mubr.msk.bf16.mxu0 %vm77_vm1, %v67_v46 }
  0x3e   :  { %998 = vmatmul.mubr.msk.bf16.gmra.mrb[28].mxu0 %vm77_vm1, %v68_v49 }
  0xd9   :  { %v971_v53 = vpop.f32.mrb[0].mxu0 }
  0xda   :  { %v173_v54 = vadd.f32 %v971_v53, %v1322_v52  ;;  %v164_v55 = vpop.f32.mrb[1].mxu0 }
  0xdb   :  { %v165_v56 = vadd.f32 %v1322_v52, %v164_v55  ;;  %v972_v57 = vpop.f32.mrb[2].mxu0 }
  0xdc   :  { %v176_v58 = vadd.f32 %v972_v57, %v1322_v52  ;;  %v167_v59 = vpop.f32.mrb[3].mxu0  ;;  %v293_v61 = vmax.f32 %v173_v54, 0.0 }
  0xdd   :  { %v168_v60 = vadd.f32 %v1322_v52, %v167_v59  ;;  %v291_v63 = vmax.f32 %v165_v56, 0.0 }
  0xde   :  { %v294_v62 = vmax.f32 %v176_v58, 0.0 }
  0xdf   :  { %v292_v0 = vmax.f32 %v168_v60, 0.0 }
  0xe0   :  { %v324_v1 = vpack.c.bf16 %v294_v62, %v293_v61 }
  0xe1   :  { %v975_v2 = vpop.f32.mrb[4].mxu0  ;;  %v323_v3 = vpack.c.bf16 %v292_v0, %v291_v63 }
  0xe2   :  { %v189_v4 = vadd.f32 %v975_v2, %v1322_v52  ;;  %v180_v5 = vpop.f32.mrb[5].mxu0 }
  0xe3   :  { %v181_v6 = vadd.f32 %v1322_v52, %v180_v5  ;;  %v976_v7 = vpop.f32.mrb[6].mxu0  ;;  %1005 = vmatprep.mubr.msk.bf16.mxu1 %vm362_vm2, %v323_v3 }
  0xe4   :  { %v297_v8 = vmax.f32 %v189_v4, 0.0  ;;  %v192_v9 = vadd.f32 %v976_v7, %v1322_v52  ;;  %v183_v10 = vpop.f32.mrb[7].mxu0  ;;  %1006 = vmatmul.mubr.msk.bf16.vlgmr.msra.gmra.mrb[0].mxu1 %vm362_vm2, %v324_v1 }
  0xe5   :  { %v184_v11 = vadd.f32 %v1322_v52, %v183_v10  ;;  %v295_v13 = vmax.f32 %v181_v6, 0.0 }
  0xe6   :  { %v298_v12 = vmax.f32 %v192_v9, 0.0 }
  0xe7   :  { %v296_v14 = vmax.f32 %v184_v11, 0.0 }
  0xe8   :  { %v326_v15 = vpack.c.bf16 %v298_v12, %v297_v8 }
  0xe9   :  { %v325_v16 = vpack.c.bf16 %v296_v14, %v295_v13  ;;  %v979_v17 = vpop.f32.mrb[8].mxu0 }
  0xea   :  { %v205_v18 = vadd.f32 %v979_v17, %v1322_v52  ;;  %v196_v19 = vpop.f32.mrb[9].mxu0 }
  0xeb   :  { %v197_v20 = vadd.f32 %v1322_v52, %v196_v19  ;;  %v980_v21 = vpop.f32.mrb[10].mxu0  ;;  %1009 = vmatprep.mubr.msk.bf16.mxu1 %vm362_vm2, %v325_v16 }
  0xec   :  { %v301_v22 = vmax.f32 %v205_v18, 0.0  ;;  %v208_v23 = vadd.f32 %v980_v21, %v1322_v52  ;;  %v199_v24 = vpop.f32.mrb[11].mxu0  ;;  %1010 = vmatmul.mubr.msk.bf16.gmra.mrb[4].mxu1 %vm362_vm2, %v326_v15 }
  0xed   :  { %v200_v25 = vadd.f32 %v1322_v52, %v199_v24  ;;  %v299_v27 = vmax.f32 %v197_v20, 0.0 }
  0xee   :  { %v302_v26 = vmax.f32 %v208_v23, 0.0 }
  0xef   :  { %v300_v28 = vmax.f32 %v200_v25, 0.0 }
  0xf0   :  { %v328_v29 = vpack.c.bf16 %v302_v26, %v301_v22 }
  0xf1   :  { %v327_v30 = vpack.c.bf16 %v300_v28, %v299_v27  ;;  %v983_v31 = vpop.f32.mrb[12].mxu0 }
  0xf2   :  { %v221_v32 = vadd.f32 %v983_v31, %v1322_v52  ;;  %v212_v33 = vpop.f32.mrb[13].mxu0 }
  0xf3   :  { %v213_v34 = vadd.f32 %v1322_v52, %v212_v33  ;;  %v984_v35 = vpop.f32.mrb[14].mxu0  ;;  %1013 = vmatprep.mubr.msk.bf16.mxu1 %vm362_vm2, %v327_v30 }
  0xf4   :  { %v305_v36 = vmax.f32 %v221_v32, 0.0  ;;  %v224_v37 = vadd.f32 %v984_v35, %v1322_v52  ;;  %v215_v38 = vpop.f32.mrb[15].mxu0  ;;  %1014 = vmatmul.mubr.msk.bf16.gmra.mrb[8].mxu1 %vm362_vm2, %v328_v29 }
  0xf5   :  { %v216_v39 = vadd.f32 %v1322_v52, %v215_v38  ;;  %v303_v41 = vmax.f32 %v213_v34, 0.0  ;;  %v1375_v38 = vld [vmem:[%s1765_s4] ss:$0 sm:$0xff] }
  0xf6   :  { %v306_v40 = vmax.f32 %v224_v37, 0.0 }
  0xf7   :  { %v304_v42 = vmax.f32 %v216_v39, 0.0 }
  0xf8   :  { %v330_v43 = vpack.c.bf16 %v306_v40, %v305_v36 }
  0xf9   :  { %v329_v44 = vpack.c.bf16 %v304_v42, %v303_v41  ;;  %v987_v45 = vpop.f32.mrb[16].mxu0 }
  0xfa   :  { %v237_v46 = vadd.f32 %v987_v45, %v1322_v52  ;;  %v228_v47 = vpop.f32.mrb[17].mxu0 }
  0xfb   :  { %v229_v48 = vadd.f32 %v1322_v52, %v228_v47  ;;  %v988_v49 = vpop.f32.mrb[18].mxu0  ;;  %1017 = vmatprep.mubr.msk.bf16.mxu1 %vm362_vm2, %v329_v44 }
  0xfc   :  { %v309_v50 = vmax.f32 %v237_v46, 0.0  ;;  %v240_v51 = vadd.f32 %v988_v49, %v1322_v52  ;;  %v231_v53 = vpop.f32.mrb[19].mxu0  ;;  %1018 = vmatmul.mubr.msk.bf16.gmra.mrb[12].mxu1 %vm362_vm2, %v330_v43 }
  0xfd   :  { %v232_v54 = vadd.f32 %v1322_v52, %v231_v53  ;;  %v307_v56 = vmax.f32 %v229_v48, 0.0 }
  0xfe   :  { %v310_v55 = vmax.f32 %v240_v51, 0.0 }
  0xff   :  { %v308_v57 = vmax.f32 %v232_v54, 0.0 }
 0x100   :  { %v332_v58 = vpack.c.bf16 %v310_v55, %v309_v50 }
 0x101   :  { %v331_v59 = vpack.c.bf16 %v308_v57, %v307_v56  ;;  %v991_v60 = vpop.f32.mrb[20].mxu0 }
 0x102   :  { %v253_v61 = vadd.f32 %v991_v60, %v1322_v52  ;;  %v244_v62 = vpop.f32.mrb[21].mxu0 }
 0x103   :  { %v245_v63 = vadd.f32 %v1322_v52, %v244_v62  ;;  %v992_v0 = vpop.f32.mrb[22].mxu0  ;;  %1021 = vmatprep.mubr.msk.bf16.mxu1 %vm362_vm2, %v331_v59 }
 0x104   :  { %v313_v1 = vmax.f32 %v253_v61, 0.0  ;;  %v256_v2 = vadd.f32 %v992_v0, %v1322_v52  ;;  %v247_v3 = vpop.f32.mrb[23].mxu0  ;;  %1022 = vmatmul.mubr.msk.bf16.gmra.mrb[16].mxu1 %vm362_vm2, %v332_v58 }
 0x105   :  { %v248_v4 = vadd.f32 %v1322_v52, %v247_v3  ;;  %v311_v6 = vmax.f32 %v245_v63, 0.0 }
 0x106   :  { %v314_v5 = vmax.f32 %v256_v2, 0.0 }
 0x107   :  { %v312_v7 = vmax.f32 %v248_v4, 0.0 }
 0x108   :  { %v334_v8 = vpack.c.bf16 %v314_v5, %v313_v1 }
 0x109   :  { %v333_v9 = vpack.c.bf16 %v312_v7, %v311_v6  ;;  %v995_v10 = vpop.f32.mrb[24].mxu0 }
 0x10a   :  { %v269_v11 = vadd.f32 %v995_v10, %v1322_v52  ;;  %v260_v12 = vpop.f32.mrb[25].mxu0 }
 0x10b   :  { %v261_v13 = vadd.f32 %v1322_v52, %v260_v12  ;;  %v996_v14 = vpop.f32.mrb[26].mxu0  ;;  %1025 = vmatprep.mubr.msk.bf16.mxu1 %vm362_vm2, %v333_v9 }
 0x10c   :  { %v317_v15 = vmax.f32 %v269_v11, 0.0  ;;  %v272_v16 = vadd.f32 %v996_v14, %v1322_v52  ;;  %v263_v17 = vpop.f32.mrb[27].mxu0  ;;  %1026 = vmatmul.mubr.msk.bf16.gmra.mrb[20].mxu1 %vm362_vm2, %v334_v8 }
 0x10d   :  { %v264_v18 = vadd.f32 %v1322_v52, %v263_v17  ;;  %v315_v20 = vmax.f32 %v261_v13, 0.0 }
 0x10e   :  { %v318_v19 = vmax.f32 %v272_v16, 0.0 }
 0x10f   :  { %v316_v21 = vmax.f32 %v264_v18, 0.0 }
 0x110   :  { %v336_v22 = vpack.c.bf16 %v318_v19, %v317_v15 }
 0x111   :  { %v335_v23 = vpack.c.bf16 %v316_v21, %v315_v20  ;;  %v999_v24 = vpop.f32.mrb[28].mxu0 }
 0x112   :  { %v285_v25 = vadd.f32 %v999_v24, %v1322_v52  ;;  %v276_v26 = vpop.f32.mrb[29].mxu0 }
 0x113   :  { %v277_v27 = vadd.f32 %v1322_v52, %v276_v26  ;;  %v1000_v28 = vpop.f32.mrb[30].mxu0  ;;  %1029 = vmatprep.mubr.msk.bf16.mxu1 %vm362_vm2, %v335_v23 }
 0x114   :  { %v321_v29 = vmax.f32 %v285_v25, 0.0  ;;  %v288_v30 = vadd.f32 %v1000_v28, %v1322_v52  ;;  %v279_v31 = vpop.f32.mrb[31].mxu0  ;;  %1030 = vmatmul.mubr.msk.bf16.gmra.mrb[24].mxu1 %vm362_vm2, %v336_v22 }
 0x115   :  { %v280_v32 = vadd.f32 %v1322_v52, %v279_v31  ;;  %v319_v34 = vmax.f32 %v277_v27, 0.0 }
 0x116   :  { %v322_v33 = vmax.f32 %v288_v30, 0.0 }
 0x117   :  { %v320_v35 = vmax.f32 %v280_v32, 0.0 }
 0x118   :  { %v338_v36 = vpack.c.bf16 %v322_v33, %v321_v29 }
 0x119   :  { %v337_v37 = vpack.c.bf16 %v320_v35, %v319_v34 }
 0x11b   :  { %1033 = vmatprep.mubr.msk.bf16.mxu1 %vm362_vm2, %v337_v37 }
 0x11c   :  { %1034 = vmatmul.mubr.msk.bf16.gmra.mrb[28].mxu1 %vm362_vm2, %v338_v36 }
 0x1b7   :  { %v1007_v39 = vpop.f32.mrb[0].mxu1 }
 0x1b8   :  { %v1378_v40 = vadd.f32 %v1007_v39, %v1375_v38  ;;  %v445_v41 = vpop.f32.mrb[1].mxu1 }
 0x1b9   :  { %v1381_v52 = vadd.f32 %v1375_v38, %v445_v41  ;;  %v1008_v42 = vpop.f32.mrb[2].mxu1 }
 0x1ba   :  { %576 = vmax.xlane.f32.xlu1 %v1378_v40  ;;  %v448_v43 = vpop.f32.mrb[3].mxu1  ;;  %v1386_v44 = vadd.f32 %v1008_v42, %v1375_v38 }
 0x1bb   :  { %572 = vmax.xlane.f32.xlu0 %v1381_v52  ;;  %v1389_v45 = vadd.f32 %v1375_v38, %v448_v43 }
 0x1be   :  { %578 = vmax.xlane.f32.xlu1 %v1386_v44 }
 0x1bf   :  { %v1011_v46 = vpop.f32.mrb[4].mxu1  ;;  %574 = vmax.xlane.f32.xlu0 %v1389_v45 }
 0x1c0   :  { %v1394_v47 = vadd.f32 %v1011_v46, %v1375_v38  ;;  %v461_v48 = vpop.f32.mrb[5].mxu1 }
 0x1c1   :  { %v1012_v49 = vpop.f32.mrb[6].mxu1  ;;  %v1402_v53 = vadd.f32 %v1375_v38, %v461_v48 }
 0x1c2   :  { %v1397_v50 = vadd.f32 %v1012_v49, %v1375_v38  ;;  %v464_v51 = vpop.f32.mrb[7].mxu1 }
 0x1c3   :  { %584 = vmax.xlane.f32.xlu0 %v1394_v47  ;;  %v1405_v54 = vadd.f32 %v1375_v38, %v464_v51 }
 0x1c4   :  { %586 = vmax.xlane.f32.xlu1 %v1397_v50 }
 0x1c7   :  { %v1015_v55 = vpop.f32.mrb[8].mxu1  ;;  %580 = vmax.xlane.f32.xlu0 %v1402_v53 }
 0x1c8   :  { %v1409_v56 = vadd.f32 %v1015_v55, %v1375_v38  ;;  %v477_v57 = vpop.f32.mrb[9].mxu1  ;;  %582 = vmax.xlane.f32.xlu1 %v1405_v54 }
 0x1c9   :  { %v1016_v58 = vpop.f32.mrb[10].mxu1  ;;  %v1418_v61 = vadd.f32 %v1375_v38, %v477_v57 }
 0x1ca   :  { %v1413_v59 = vadd.f32 %v1016_v58, %v1375_v38  ;;  %v480_v60 = vpop.f32.mrb[11].mxu1 }
 0x1cb   :  { %592 = vmax.xlane.f32.xlu0 %v1409_v56  ;;  %v1421_v62 = vadd.f32 %v1375_v38, %v480_v60 }
 0x1cc   :  { %594 = vmax.xlane.f32.xlu1 %v1413_v59 }
 0x1cf   :  { %v1019_v63 = vpop.f32.mrb[12].mxu1  ;;  %588 = vmax.xlane.f32.xlu0 %v1418_v61 }
 0x1d0   :  { %v1425_v0 = vadd.f32 %v1019_v63, %v1375_v38  ;;  %v493_v1 = vpop.f32.mrb[13].mxu1  ;;  %590 = vmax.xlane.f32.xlu1 %v1421_v62 }
 0x1d1   :  { %v1020_v2 = vpop.f32.mrb[14].mxu1  ;;  %v1434_v5 = vadd.f32 %v1375_v38, %v493_v1 }
 0x1d2   :  { %v1429_v3 = vadd.f32 %v1020_v2, %v1375_v38  ;;  %v496_v4 = vpop.f32.mrb[15].mxu1 }
 0x1d3   :  { %600 = vmax.xlane.f32.xlu0 %v1425_v0  ;;  %v1437_v6 = vadd.f32 %v1375_v38, %v496_v4 }
 0x1d4   :  { %602 = vmax.xlane.f32.xlu1 %v1429_v3 }
 0x1d7   :  { %v1023_v7 = vpop.f32.mrb[16].mxu1  ;;  %596 = vmax.xlane.f32.xlu0 %v1434_v5 }
 0x1d8   :  { %v1441_v8 = vadd.f32 %v1023_v7, %v1375_v38  ;;  %v509_v9 = vpop.f32.mrb[17].mxu1  ;;  %598 = vmax.xlane.f32.xlu1 %v1437_v6 }
 0x1d9   :  { %v1024_v10 = vpop.f32.mrb[18].mxu1  ;;  %v1450_v13 = vadd.f32 %v1375_v38, %v509_v9 }
 0x1da   :  { %v1445_v11 = vadd.f32 %v1024_v10, %v1375_v38  ;;  %v512_v12 = vpop.f32.mrb[19].mxu1 }
 0x1db   :  { %608 = vmax.xlane.f32.xlu0 %v1441_v8  ;;  %v1453_v14 = vadd.f32 %v1375_v38, %v512_v12 }
 0x1dc   :  { %610 = vmax.xlane.f32.xlu1 %v1445_v11 }
 0x1df   :  { %v1027_v15 = vpop.f32.mrb[20].mxu1  ;;  %604 = vmax.xlane.f32.xlu0 %v1450_v13 }
 0x1e0   :  { %v1457_v16 = vadd.f32 %v1027_v15, %v1375_v38  ;;  %v525_v17 = vpop.f32.mrb[21].mxu1  ;;  %606 = vmax.xlane.f32.xlu1 %v1453_v14 }
 0x1e1   :  { %v1028_v18 = vpop.f32.mrb[22].mxu1  ;;  %v1466_v21 = vadd.f32 %v1375_v38, %v525_v17 }
 0x1e2   :  { %v1461_v19 = vadd.f32 %v1028_v18, %v1375_v38  ;;  %v528_v20 = vpop.f32.mrb[23].mxu1 }
 0x1e3   :  { %616 = vmax.xlane.f32.xlu0 %v1457_v16  ;;  %v1469_v22 = vadd.f32 %v1375_v38, %v528_v20 }
 0x1e4   :  { %618 = vmax.xlane.f32.xlu1 %v1461_v19 }
 0x1e7   :  { %v1031_v23 = vpop.f32.mrb[24].mxu1  ;;  %612 = vmax.xlane.f32.xlu0 %v1466_v21 }
 0x1e8   :  { %v1473_v24 = vadd.f32 %v1031_v23, %v1375_v38  ;;  %v541_v25 = vpop.f32.mrb[25].mxu1  ;;  %614 = vmax.xlane.f32.xlu1 %v1469_v22 }
 0x1e9   :  { %v1032_v26 = vpop.f32.mrb[26].mxu1  ;;  %v1482_v29 = vadd.f32 %v1375_v38, %v541_v25 }
 0x1ea   :  { %v1477_v27 = vadd.f32 %v1032_v26, %v1375_v38  ;;  %v544_v28 = vpop.f32.mrb[27].mxu1 }
 0x1eb   :  { %624 = vmax.xlane.f32.xlu0 %v1473_v24  ;;  %v1485_v30 = vadd.f32 %v1375_v38, %v544_v28 }
 0x1ec   :  { %626 = vmax.xlane.f32.xlu1 %v1477_v27 }
 0x1ef   :  { %v1035_v31 = vpop.f32.mrb[28].mxu1  ;;  %620 = vmax.xlane.f32.xlu0 %v1482_v29 }
 0x1f0   :  { %v557_v32 = vpop.f32.mrb[29].mxu1  ;;  %622 = vmax.xlane.f32.xlu1 %v1485_v30  ;;  %v1497_v37 = vadd.f32 %v1035_v31, %v1375_v38 }
 0x1f1   :  { %v1490_v33 = vadd.f32 %v1375_v38, %v557_v32  ;;  %v1036_v34 = vpop.f32.mrb[30].mxu1 }
 0x1f2   :  { %v560_v35 = vpop.f32.mrb[31].mxu1  ;;  %v1501_v39 = vadd.f32 %v1036_v34, %v1375_v38 }
 0x1f3   :  { %v1493_v36 = vadd.f32 %v1375_v38, %v560_v35  ;;  %628 = vmax.xlane.f32.xlu0 %v1490_v33 }
 0x1f5   :  { %630 = vmax.xlane.f32.xlu1 %v1493_v36 }
 0x1f7   :  { %632 = vmax.xlane.f32.xlu0 %v1497_v37 }
 0x1f9   :  { %634 = vmax.xlane.f32.xlu1 %v1501_v39 }
 0x247   :  { %v577_v41 = vpop.xlane.xlu1 %576 }
 0x248   :  { %v638_v42 = vsub.f32 %v1378_v40, %v577_v41  ;;  %v573_v43 = vpop.xlane.xlu0 %572 }
 0x249   :  { %v636_v46 = vsub.f32 %v1381_v52, %v573_v43 }
 0x24a   :  { %v672_v48 = vmul.f32 1.442695, %v638_v42 }
 0x24b   :  { %v668_v49 = vmul.f32 1.442695, %v636_v46  ;;  %v579_v51 = vpop.xlane.xlu1 %578 }
 0x24c   :  { %1040 = vpow2.f32 %v672_v48  ;;  %v639_v55 = vsub.f32 %v1386_v44, %v579_v51  ;;  %v575_v57 = vpop.xlane.xlu0 %574 }
 0x24d   :  { %v637_v38 = vsub.f32 %v1389_v45, %v575_v57  ;;  %1042 = vpow2.f32 %v668_v49 }
 0x24e   :  { %v674_v58 = vmul.f32 1.442695, %v639_v55 }
 0x24f   :  { %v670_v60 = vmul.f32 1.442695, %v637_v38 }
 0x250   :  { %1044 = vpow2.f32 %v674_v58  ;;  %v585_v63 = vpop.xlane.xlu0 %584 }
 0x251   :  { %v642_v1 = vsub.f32 %v1394_v47, %v585_v63  ;;  %v587_v40 = vpop.xlane.xlu1 %586  ;;  %1046 = vpow2.f32 %v670_v60 }
 0x252   :  { %v643_v2 = vsub.f32 %v1397_v50, %v587_v40 }
 0x253   :  { %v680_v52 = vmul.f32 1.442695, %v642_v1 }
 0x254   :  { %v682_v4 = vmul.f32 1.442695, %v643_v2  ;;  %v581_v7 = vpop.xlane.xlu0 %580 }
 0x255   :  { %1048 = vpow2.f32 %v680_v52  ;;  %v640_v44 = vsub.f32 %v1402_v53, %v581_v7  ;;  %v583_v9 = vpop.xlane.xlu1 %582 }
 0x256   :  { %v1512_v10 = vpop.eup %1040  ;;  %v641_v45 = vsub.f32 %v1405_v54, %v583_v9  ;;  %1050 = vpow2.f32 %v682_v4 }
 0x257   :  { %v676_v12 = vmul.f32 1.442695, %v640_v44  ;;  %736 = vadd.xlane.f32.xlu0 %v1512_v10  ;;  %v1516_v17 = vpop.eup %1042 }
 0x258   :  { %v678_v47 = vmul.f32 1.442695, %v641_v45  ;;  %v593_v15 = vpop.xlane.xlu0 %592 }
 0x259   :  { %1052 = vpow2.f32 %v676_v12  ;;  %v646_v50 = vsub.f32 %v1409_v56, %v593_v15  ;;  %v595_v18 = vpop.xlane.xlu1 %594 }
 0x25a   :  { %v1519_v20 = vpop.eup %1044  ;;  %v647_v53 = vsub.f32 %v1413_v59, %v595_v18  ;;  %1054 = vpow2.f32 %v678_v47 }
 0x25b   :  { %v688_v23 = vmul.f32 1.442695, %v646_v50  ;;  %738 = vadd.xlane.f32.xlu1 %v1519_v20  ;;  %732 = vadd.xlane.f32.xlu0 %v1516_v17  ;;  %v1525_v31 = vpop.eup %1046 }
 0x25c   :  { %v690_v54 = vmul.f32 1.442695, %v647_v53  ;;  %v589_v25 = vpop.xlane.xlu0 %588 }
 0x25d   :  { %1056 = vpow2.f32 %v688_v23  ;;  %v644_v26 = vsub.f32 %v1418_v61, %v589_v25  ;;  %v591_v28 = vpop.xlane.xlu1 %590 }
 0x25e   :  { %v645_v56 = vsub.f32 %v1421_v62, %v591_v28  ;;  %1058 = vpow2.f32 %v690_v54 }
 0x25f   :  { %v1528_v32 = vpop.eup %1048  ;;  %v684_v34 = vmul.f32 1.442695, %v644_v26  ;;  %734 = vadd.xlane.f32.xlu1 %v1525_v31 }
 0x260   :  { %v686_v59 = vmul.f32 1.442695, %v645_v56  ;;  %744 = vadd.xlane.f32.xlu0 %v1528_v32  ;;  %v601_v35 = vpop.xlane.xlu0 %600  ;;  %v1533_v61 = vpop.eup %1050 }
 0x261   :  { %1060 = vpow2.f32 %v684_v34  ;;  %v650_v41 = vsub.f32 %v1425_v0, %v601_v35  ;;  %v603_v42 = vpop.xlane.xlu1 %602 }
 0x262   :  { %v651_v43 = vsub.f32 %v1429_v3, %v603_v42  ;;  %1062 = vpow2.f32 %v686_v59 }
 0x263   :  { %v1536_v46 = vpop.eup %1052  ;;  %v696_v62 = vmul.f32 1.442695, %v650_v41  ;;  %746 = vadd.xlane.f32.xlu1 %v1533_v61 }
 0x264   :  { %v698_v48 = vmul.f32 1.442695, %v651_v43  ;;  %740 = vadd.xlane.f32.xlu0 %v1536_v46  ;;  %v597_v49 = vpop.xlane.xlu0 %596  ;;  %v1541_v0 = vpop.eup %1054 }
 0x265   :  { %1064 = vpow2.f32 %v696_v62  ;;  %v648_v51 = vsub.f32 %v1434_v5, %v597_v49  ;;  %v599_v55 = vpop.xlane.xlu1 %598 }
 0x266   :  { %v649_v57 = vsub.f32 %v1437_v6, %v599_v55  ;;  %1066 = vpow2.f32 %v698_v48 }
 0x267   :  { %v1544_v38 = vpop.eup %1056  ;;  %v692_v3 = vmul.f32 1.442695, %v648_v51  ;;  %742 = vadd.xlane.f32.xlu1 %v1541_v0 }
 0x268   :  { %v694_v58 = vmul.f32 1.442695, %v649_v57  ;;  %752 = vadd.xlane.f32.xlu0 %v1544_v38  ;;  %v609_v60 = vpop.xlane.xlu0 %608  ;;  %v1549_v5 = vpop.eup %1058 }
 0x269   :  { %1068 = vpow2.f32 %v692_v3  ;;  %v654_v63 = vsub.f32 %v1441_v8, %v609_v60  ;;  %v611_v1 = vpop.xlane.xlu1 %610 }
 0x26a   :  { %v655_v40 = vsub.f32 %v1445_v11, %v611_v1  ;;  %1070 = vpow2.f32 %v694_v58 }
 0x26b   :  { %v1552_v2 = vpop.eup %1060  ;;  %v704_v6 = vmul.f32 1.442695, %v654_v63  ;;  %754 = vadd.xlane.f32.xlu1 %v1549_v5 }
 0x26c   :  { %v706_v52 = vmul.f32 1.442695, %v655_v40  ;;  %748 = vadd.xlane.f32.xlu0 %v1552_v2  ;;  %v605_v4 = vpop.xlane.xlu0 %604  ;;  %v1557_v8 = vpop.eup %1062 }
 0x26d   :  { %1072 = vpow2.f32 %v704_v6  ;;  %v652_v7 = vsub.f32 %v1450_v13, %v605_v4  ;;  %v607_v44 = vpop.xlane.xlu1 %606 }
 0x26e   :  { %v653_v9 = vsub.f32 %v1453_v14, %v607_v44  ;;  %1074 = vpow2.f32 %v706_v52 }
 0x26f   :  { %v1560_v45 = vpop.eup %1064  ;;  %v700_v11 = vmul.f32 1.442695, %v652_v7  ;;  %750 = vadd.xlane.f32.xlu1 %v1557_v8 }
 0x270   :  { %v702_v12 = vmul.f32 1.442695, %v653_v9  ;;  %760 = vadd.xlane.f32.xlu0 %v1560_v45  ;;  %v617_v47 = vpop.xlane.xlu0 %616  ;;  %v1565_v13 = vpop.eup %1066 }
 0x271   :  { %1076 = vpow2.f32 %v700_v11  ;;  %v658_v15 = vsub.f32 %v1457_v16, %v617_v47  ;;  %v619_v50 = vpop.xlane.xlu1 %618 }
 0x272   :  { %v659_v18 = vsub.f32 %v1461_v19, %v619_v50  ;;  %1078 = vpow2.f32 %v702_v12 }
 0x273   :  { %v1568_v53 = vpop.eup %1068  ;;  %v712_v14 = vmul.f32 1.442695, %v658_v15  ;;  %762 = vadd.xlane.f32.xlu1 %v1565_v13 }
 0x274   :  { %v714_v23 = vmul.f32 1.442695, %v659_v18  ;;  %756 = vadd.xlane.f32.xlu0 %v1568_v53  ;;  %v613_v54 = vpop.xlane.xlu0 %612  ;;  %v1573_v16 = vpop.eup %1070 }
 0x275   :  { %1080 = vpow2.f32 %v712_v14  ;;  %v656_v25 = vsub.f32 %v1466_v21, %v613_v54  ;;  %v615_v26 = vpop.xlane.xlu1 %614 }
 0x276   :  { %v657_v28 = vsub.f32 %v1469_v22, %v615_v26  ;;  %1082 = vpow2.f32 %v714_v23 }
 0x277   :  { %v1576_v56 = vpop.eup %1072  ;;  %v708_v19 = vmul.f32 1.442695, %v656_v25  ;;  %758 = vadd.xlane.f32.xlu1 %v1573_v16 }
 0x278   :  { %v710_v34 = vmul.f32 1.442695, %v657_v28  ;;  %768 = vadd.xlane.f32.xlu0 %v1576_v56  ;;  %v625_v59 = vpop.xlane.xlu0 %624  ;;  %v1581_v21 = vpop.eup %1074 }
 0x279   :  { %1084 = vpow2.f32 %v708_v19  ;;  %v662_v35 = vsub.f32 %v1473_v24, %v625_v59  ;;  %v627_v41 = vpop.xlane.xlu1 %626 }
 0x27a   :  { %v663_v42 = vsub.f32 %v1477_v27, %v627_v41  ;;  %1086 = vpow2.f32 %v710_v34 }
 0x27b   :  { %v1584_v43 = vpop.eup %1076  ;;  %v720_v22 = vmul.f32 1.442695, %v662_v35  ;;  %770 = vadd.xlane.f32.xlu1 %v1581_v21 }
 0x27c   :  { %v722_v62 = vmul.f32 1.442695, %v663_v42  ;;  %764 = vadd.xlane.f32.xlu0 %v1584_v43  ;;  %v621_v48 = vpop.xlane.xlu0 %620  ;;  %v1589_v24 = vpop.eup %1078 }
 0x27d   :  { %1088 = vpow2.f32 %v720_v22  ;;  %v660_v49 = vsub.f32 %v1482_v29, %v621_v48  ;;  %v623_v51 = vpop.xlane.xlu1 %622 }
 0x27e   :  { %v661_v55 = vsub.f32 %v1485_v30, %v623_v51  ;;  %1090 = vpow2.f32 %v722_v62 }
 0x27f   :  { %v1592_v57 = vpop.eup %1080  ;;  %v716_v27 = vmul.f32 1.442695, %v660_v49  ;;  %766 = vadd.xlane.f32.xlu1 %v1589_v24 }
 0x280   :  { %v718_v3 = vmul.f32 1.442695, %v661_v55  ;;  %776 = vadd.xlane.f32.xlu0 %v1592_v57  ;;  %v629_v58 = vpop.xlane.xlu0 %628  ;;  %v1597_v63 = vpop.eup %1082 }
 0x281   :  { %1092 = vpow2.f32 %v716_v27  ;;  %v664_v60 = vsub.f32 %v1490_v33, %v629_v58 }
 0x282   :  { %v631_v29 = vpop.xlane.xlu1 %630  ;;  %1094 = vpow2.f32 %v718_v3 }
 0x283   :  { %v1599_v1 = vpop.eup %1084  ;;  %v724_v40 = vmul.f32 1.442695, %v664_v60  ;;  %v665_v30 = vsub.f32 %v1493_v36, %v631_v29  ;;  %778 = vadd.xlane.f32.xlu1 %v1597_v63 }
 0x284   :  { %772 = vadd.xlane.f32.xlu0 %v1599_v1  ;;  %v633_v6 = vpop.xlane.xlu0 %632  ;;  %v1605_v7 = vpop.eup %1086 }
 0x285   :  { %1096 = vpow2.f32 %v724_v40  ;;  %v726_v52 = vmul.f32 1.442695, %v665_v30  ;;  %v666_v4 = vsub.f32 %v1497_v37, %v633_v6 }
 0x286   :  { %v635_v33 = vpop.xlane.xlu1 %634 }
 0x287   :  { %v1607_v44 = vpop.eup %1088  ;;  %1098 = vpow2.f32 %v726_v52  ;;  %v728_v9 = vmul.f32 1.442695, %v666_v4  ;;  %v667_v11 = vsub.f32 %v1501_v39, %v635_v33  ;;  %774 = vadd.xlane.f32.xlu1 %v1605_v7 }
 0x288   :  { %784 = vadd.xlane.f32.xlu0 %v1607_v44  ;;  %v1612_v12 = vpop.eup %1090 }
 0x289   :  { %1100 = vpow2.f32 %v728_v9  ;;  %v730_v36 = vmul.f32 1.442695, %v667_v11 }
 0x28b   :  { %v1614_v47 = vpop.eup %1092  ;;  %1102 = vpow2.f32 %v730_v36  ;;  %786 = vadd.xlane.f32.xlu1 %v1612_v12 }
 0x28c   :  { %780 = vadd.xlane.f32.xlu0 %v1614_v47  ;;  %v1618_v37 = vpop.eup %1094 }
 0x28f   :  { %v1620_v15 = vpop.eup %1096  ;;  %782 = vadd.xlane.f32.xlu1 %v1618_v37 }
 0x290   :  { %788 = vadd.xlane.f32.xlu0 %v1620_v15 }
 0x291   :  { %v1624_v39 = vpop.eup %1098 }
 0x293   :  { %v1626_v50 = vpop.eup %1100  ;;  %790 = vadd.xlane.f32.xlu1 %v1624_v39 }
 0x294   :  { %792 = vadd.xlane.f32.xlu0 %v1626_v50 }
 0x295   :  { %v1630_v18 = vpop.eup %1102 }
 0x297   :  { %794 = vadd.xlane.f32.xlu1 %v1630_v18 }
 0x2e4   :  { %v737_v14 = vpop.xlane.xlu0 %736 }
 0x2e5   :  { %1104 = vrcp.f32 %v737_v14 }
 0x2e8   :  { %v739_v23 = vpop.xlane.xlu1 %738  ;;  %v733_v54 = vpop.xlane.xlu0 %732 }
 0x2e9   :  { %1106 = vrcp.f32 %v739_v23 }
 0x2ea   :  { %1108 = vrcp.f32 %v733_v54 }
 0x2ec   :  { %v735_v25 = vpop.xlane.xlu1 %734 }
 0x2ed   :  { %1110 = vrcp.f32 %v735_v25  ;;  %v745_v26 = vpop.xlane.xlu0 %744 }
 0x2ee   :  { %1112 = vrcp.f32 %v745_v26 }
 0x2ef   :  { %v1105_v28 = vpop.eup %1104 }
 0x2f0   :  { %v801_v19 = vmul.f32 %v1105_v28, %v1512_v10  ;;  %v747_v34 = vpop.xlane.xlu1 %746 }
 0x2f1   :  { %1114 = vrcp.f32 %v747_v34  ;;  %v741_v59 = vpop.xlane.xlu0 %740 }
 0x2f2   :  { %862 = vst [vmem:[%s1766_s5 + $0x10] sm:$0xff] %v801_v19  ;;  %1116 = vrcp.f32 %v741_v59 }
 0x2f3   :  { %v1107_v35 = vpop.eup %1106 }
 0x2f4   :  { %v1109_v41 = vpop.eup %1108  ;;  %v803_v42 = vmul.f32 %v1107_v35, %v1519_v20  ;;  %v743_v22 = vpop.xlane.xlu1 %742 }
 0x2f5   :  { %v797_v62 = vmul.f32 %v1109_v41, %v1516_v17  ;;  %1118 = vrcp.f32 %v743_v22  ;;  %v753_v48 = vpop.xlane.xlu0 %752 }
 0x2f6   :  { %863 = vst [vmem:[%s1766_s5 + $0x18] sm:$0xff] %v803_v42  ;;  %1120 = vrcp.f32 %v753_v48 }
 0x2f7   :  { %v1111_v10 = vpop.eup %1110  ;;  %860 = vst [vmem:[%s1766_s5] sm:$0xff] %v797_v62 }
 0x2f8   :  { %v1113_v49 = vpop.eup %1112  ;;  %v799_v51 = vmul.f32 %v1111_v10, %v1525_v31  ;;  %v755_v55 = vpop.xlane.xlu1 %754 }
 0x2f9   :  { %v809_v20 = vmul.f32 %v1113_v49, %v1528_v32  ;;  %1122 = vrcp.f32 %v755_v55  ;;  %v749_v17 = vpop.xlane.xlu0 %748 }
 0x2fa   :  { %861 = vst [vmem:[%s1766_s5 + $0x8] sm:$0xff] %v799_v51  ;;  %1124 = vrcp.f32 %v749_v17 }
 0x2fb   :  { %v1115_v27 = vpop.eup %1114  ;;  %866 = vst [vmem:[%s1766_s5 + $0x30] sm:$0xff] %v809_v20 }
 0x2fc   :  { %v1117_v3 = vpop.eup %1116  ;;  %v811_v58 = vmul.f32 %v1115_v27, %v1533_v61  ;;  %v751_v60 = vpop.xlane.xlu1 %750 }
 0x2fd   :  { %v805_v31 = vmul.f32 %v1117_v3, %v1536_v46  ;;  %1126 = vrcp.f32 %v751_v60  ;;  %v761_v32 = vpop.xlane.xlu0 %760 }
 0x2fe   :  { %867 = vst [vmem:[%s1766_s5 + $0x38] sm:$0xff] %v811_v58  ;;  %1128 = vrcp.f32 %v761_v32 }
 0x2ff   :  { %v1119_v29 = vpop.eup %1118  ;;  %864 = vst [vmem:[%s1766_s5 + $0x20] sm:$0xff] %v805_v31 }
 0x300   :  { %v1121_v40 = vpop.eup %1120  ;;  %v807_v30 = vmul.f32 %v1119_v29, %v1541_v0  ;;  %v763_v6 = vpop.xlane.xlu1 %762 }
 0x301   :  { %v817_v61 = vmul.f32 %v1121_v40, %v1544_v38  ;;  %1130 = vrcp.f32 %v763_v6  ;;  %v757_v46 = vpop.xlane.xlu0 %756 }
 0x302   :  { %865 = vst [vmem:[%s1766_s5 + $0x28] sm:$0xff] %v807_v30  ;;  %1132 = vrcp.f32 %v757_v46 }
 0x303   :  { %v1123_v52 = vpop.eup %1122  ;;  %870 = vst [vmem:[%s1766_s5 + $0x50] sm:$0xff] %v817_v61 }
 0x304   :  { %v1125_v4 = vpop.eup %1124  ;;  %v819_v33 = vmul.f32 %v1123_v52, %v1549_v5  ;;  %v759_v9 = vpop.xlane.xlu1 %758 }
 0x305   :  { %v813_v0 = vmul.f32 %v1125_v4, %v1552_v2  ;;  %1134 = vrcp.f32 %v759_v9  ;;  %v769_v38 = vpop.xlane.xlu0 %768 }
 0x306   :  { %871 = vst [vmem:[%s1766_s5 + $0x58] sm:$0xff] %v819_v33  ;;  %1136 = vrcp.f32 %v769_v38 }
 0x307   :  { %v1127_v11 = vpop.eup %1126  ;;  %868 = vst [vmem:[%s1766_s5 + $0x40] sm:$0xff] %v813_v0 }
 0x308   :  { %v1129_v36 = vpop.eup %1128  ;;  %v815_v14 = vmul.f32 %v1127_v11, %v1557_v8  ;;  %v771_v23 = vpop.xlane.xlu1 %770 }
 0x309   :  { %v825_v5 = vmul.f32 %v1129_v36, %v1560_v45  ;;  %1138 = vrcp.f32 %v771_v23  ;;  %v765_v2 = vpop.xlane.xlu0 %764 }
 0x30a   :  { %869 = vst [vmem:[%s1766_s5 + $0x48] sm:$0xff] %v815_v14  ;;  %1140 = vrcp.f32 %v765_v2 }
 0x30b   :  { %v1131_v54 = vpop.eup %1130  ;;  %874 = vst [vmem:[%s1766_s5 + $0x70] sm:$0xff] %v825_v5 }
 0x30c   :  { %v1133_v25 = vpop.eup %1132  ;;  %v827_v26 = vmul.f32 %v1131_v54, %v1565_v13  ;;  %v767_v28 = vpop.xlane.xlu1 %766 }
 0x30d   :  { %v821_v8 = vmul.f32 %v1133_v25, %v1568_v53  ;;  %1142 = vrcp.f32 %v767_v28  ;;  %v777_v45 = vpop.xlane.xlu0 %776 }
 0x30e   :  { %875 = vst [vmem:[%s1766_s5 + $0x78] sm:$0xff] %v827_v26  ;;  %1144 = vrcp.f32 %v777_v45 }
 0x30f   :  { %v1135_v19 = vpop.eup %1134  ;;  %872 = vst [vmem:[%s1766_s5 + $0x60] sm:$0xff] %v821_v8 }
 0x310   :  { %v1137_v34 = vpop.eup %1136  ;;  %v823_v59 = vmul.f32 %v1135_v19, %v1573_v16  ;;  %v779_v35 = vpop.xlane.xlu1 %778 }
 0x311   :  { %v833_v13 = vmul.f32 %v1137_v34, %v1576_v56  ;;  %1146 = vrcp.f32 %v779_v35  ;;  %v773_v53 = vpop.xlane.xlu0 %772 }
 0x312   :  { %873 = vst [vmem:[%s1766_s5 + $0x68] sm:$0xff] %v823_v59  ;;  %1148 = vrcp.f32 %v773_v53 }
 0x313   :  { %v1139_v41 = vpop.eup %1138  ;;  %878 = vst [vmem:[%s1766_s5 + $0x90] sm:$0xff] %v833_v13 }
 0x314   :  { %v1141_v42 = vpop.eup %1140  ;;  %v835_v22 = vmul.f32 %v1139_v41, %v1581_v21  ;;  %v775_v62 = vpop.xlane.xlu1 %774 }
 0x315   :  { %v829_v16 = vmul.f32 %v1141_v42, %v1584_v43  ;;  %1150 = vrcp.f32 %v775_v62  ;;  %v785_v56 = vpop.xlane.xlu0 %784 }
 0x316   :  { %879 = vst [vmem:[%s1766_s5 + $0x98] sm:$0xff] %v835_v22  ;;  %1152 = vrcp.f32 %v785_v56 }
 0x317   :  { %v1143_v48 = vpop.eup %1142  ;;  %876 = vst [vmem:[%s1766_s5 + $0x80] sm:$0xff] %v829_v16 }
 0x318   :  { %v1145_v10 = vpop.eup %1144  ;;  %v831_v49 = vmul.f32 %v1143_v48, %v1589_v24  ;;  %v787_v51 = vpop.xlane.xlu1 %786 }
 0x319   :  { %v841_v21 = vmul.f32 %v1145_v10, %v1592_v57  ;;  %1154 = vrcp.f32 %v787_v51  ;;  %v781_v43 = vpop.xlane.xlu0 %780 }
 0x31a   :  { %877 = vst [vmem:[%s1766_s5 + $0x88] sm:$0xff] %v831_v49  ;;  %1156 = vrcp.f32 %v781_v43 }
 0x31b   :  { %v1147_v55 = vpop.eup %1146  ;;  %882 = vst [vmem:[%s1766_s5 + $0xb0] sm:$0xff] %v841_v21 }
 0x31c   :  { %v1149_v20 = vpop.eup %1148  ;;  %v843_v17 = vmul.f32 %v1147_v55, %v1597_v63  ;;  %v783_v27 = vpop.xlane.xlu1 %782 }
 0x31d   :  { %v837_v24 = vmul.f32 %v1149_v20, %v1599_v1  ;;  %1158 = vrcp.f32 %v783_v27  ;;  %v789_v57 = vpop.xlane.xlu0 %788 }
 0x31e   :  { %883 = vst [vmem:[%s1766_s5 + $0xb8] sm:$0xff] %v843_v17  ;;  %1160 = vrcp.f32 %v789_v57 }
 0x31f   :  { %v1151_v3 = vpop.eup %1150  ;;  %880 = vst [vmem:[%s1766_s5 + $0xa0] sm:$0xff] %v837_v24 }
 0x320   :  { %v1153_v58 = vpop.eup %1152  ;;  %v839_v60 = vmul.f32 %v1151_v3, %v1605_v7  ;;  %v791_v31 = vpop.xlane.xlu1 %790 }
 0x321   :  { %v849_v63 = vmul.f32 %v1153_v58, %v1607_v44  ;;  %1162 = vrcp.f32 %v791_v31  ;;  %v793_v1 = vpop.xlane.xlu0 %792 }
 0x322   :  { %881 = vst [vmem:[%s1766_s5 + $0xa8] sm:$0xff] %v839_v60  ;;  %1164 = vrcp.f32 %v793_v1 }
 0x323   :  { %v1155_v32 = vpop.eup %1154  ;;  %886 = vst [vmem:[%s1766_s5 + $0xd0] sm:$0xff] %v849_v63 }
 0x324   :  { %v1157_v29 = vpop.eup %1156  ;;  %v851_v40 = vmul.f32 %v1155_v32, %v1612_v12  ;;  %v795_v30 = vpop.xlane.xlu1 %794 }
 0x325   :  { %v845_v7 = vmul.f32 %v1157_v29, %v1614_v47  ;;  %1166 = vrcp.f32 %v795_v30 }
 0x326   :  { %887 = vst [vmem:[%s1766_s5 + $0xd8] sm:$0xff] %v851_v40 }
 0x327   :  { %v1159_v44 = vpop.eup %1158  ;;  %884 = vst [vmem:[%s1766_s5 + $0xc0] sm:$0xff] %v845_v7 }
 0x328   :  { %v1161_v6 = vpop.eup %1160  ;;  %v847_v61 = vmul.f32 %v1159_v44, %v1618_v37 }
 0x329   :  { %v853_v46 = vmul.f32 %v1161_v6, %v1620_v15 }
 0x32a   :  { %885 = vst [vmem:[%s1766_s5 + $0xc8] sm:$0xff] %v847_v61 }
 0x32b   :  { %v1163_v12 = vpop.eup %1162  ;;  %888 = vst [vmem:[%s1766_s5 + $0xe0] sm:$0xff] %v853_v46 }
 0x32c   :  { %v1165_v47 = vpop.eup %1164  ;;  %v855_v52 = vmul.f32 %v1163_v12, %v1624_v39 }
 0x32d   :  { %v857_v4 = vmul.f32 %v1165_v47, %v1626_v50 }
 0x32e   :  { %889 = vst [vmem:[%s1766_s5 + $0xe8] sm:$0xff] %v855_v52 }
 0x32f   :  { %v1167_v37 = vpop.eup %1166  ;;  %890 = vst [vmem:[%s1766_s5 + $0xf0] sm:$0xff] %v857_v4 }
 0x330   :  { %v859_v15 = vmul.f32 %v1167_v37, %v1630_v18 }
 0x332   :  { %891 = vst [vmem:[%s1766_s5 + $0xf8] sm:$0xff] %v859_v15 }

</bundles_post_ra>
